<compile_context>
chip_gen: v7x
topology: tpu7x:2x2x1
jax: 0.10.0
libtpu: 0.0.40
codegen_flags: <defaults>
</compile_context>

<pallas_src>
import jax
import jax.numpy as jnp
from jax.experimental import pallas as pl
from jax.experimental.pallas import tpu as pltpu

EPS = 1e-5


def bn_conv1x1_kernel(x_ref, gamma_ref, beta_ref, w_ref, o_ref):
    # x_ref:     (N, Cin, M)   f32   NCHW-native slab, M = H*W
    # gamma_ref: (Cin, 1)      f32
    # beta_ref:  (Cin, 1)      f32
    # w_ref:     (Cout, Cin)   bf16  1x1 conv weight (OI), pre-cast in wrapper
    # o_ref:     (N, Cout, M)  f32
    x = x_ref[...]
    n, c, m = x.shape
    inv_cnt = jnp.float32(1.0 / (n * m))

    # --- BatchNorm2d (training mode): per-channel batch mean / biased variance ---
    # Two single-axis reductions (lane reduce, then leading-dim reduce); mean-shifted
    # variance avoids E[x^2]-mean^2 cancellation.
    s = jnp.sum(x, axis=2, keepdims=True)                       # (N, Cin, 1)
    mean = jnp.sum(s, axis=0, keepdims=True) * inv_cnt          # (1, Cin, 1)
    xc = x - mean
    sq = jnp.sum(xc * xc, axis=2, keepdims=True)                # (N, Cin, 1)
    var = jnp.sum(sq, axis=0, keepdims=True) * inv_cnt          # (1, Cin, 1)
    inv_std = jax.lax.rsqrt(var + EPS)

    scale = gamma_ref[...][None] * inv_std                      # (1, Cin, 1)
    shift = beta_ref[...][None]                                 # (1, Cin, 1)

    # Normalize the activation slab (VPU, f32), then single cast to bf16 for the MXU.
    y = (xc * scale + shift).astype(jnp.bfloat16)               # (N, Cin, M)

    # --- 1x1 conv: one (Cout,Cin)@(Cin,M) MXU matmul per image, f32 accumulation ---
    w = w_ref[...]                                              # (Cout, Cin) bf16
    for i in range(n):  # N is a compile-time constant (1 at the spec shape)
        o_ref[i] = jnp.dot(w, y[i], preferred_element_type=jnp.float32)


def bn_conv2d(x_nchw, gamma, beta, w_oihw):
    """x_nchw: (N, Cin, H, W); gamma/beta: (Cin,); w_oihw: (Cout, Cin, 1, 1)."""
    N, C, H, W = x_nchw.shape
    Cout = w_oihw.shape[0]
    M = H * W

    x3d = x_nchw.reshape(N, C, M)                               # free: no data movement
    # bf16 weight: in production store it pre-cast once; done here for self-containment.
    w2d = w_oihw.reshape(Cout, C).astype(jnp.bfloat16)          # halves weight DMA
    g = gamma.reshape(C, 1).astype(jnp.float32)
    b = beta.reshape(C, 1).astype(jnp.float32)

    out3d = pl.pallas_call(
        bn_conv1x1_kernel,
        out_shape=jax.ShapeDtypeStruct((N, Cout, M), jnp.float32),
        in_specs=[pl.BlockSpec(memory_space=pltpu.MemorySpace.VMEM)] * 4,
        out_specs=pl.BlockSpec(memory_space=pltpu.MemorySpace.VMEM),
    )(x3d, g, b, w2d)

    return out3d.reshape(N, Cout, H, W)                         # free: no data movement


def _reference(x_nchw, gamma, beta, w_oihw):
    # plain-JAX f32 reference (BatchNorm2d training-mode semantics + 1x1 conv)
    mean = jnp.mean(x_nchw, axis=(0, 2, 3), keepdims=True)
    var = jnp.mean((x_nchw - mean) ** 2, axis=(0, 2, 3), keepdims=True)
    y = (x_nchw - mean) * jax.lax.rsqrt(var + EPS)
    y = y * gamma.reshape(1, -1, 1, 1) + beta.reshape(1, -1, 1, 1)
    w2d = w_oihw.reshape(w_oihw.shape[0], w_oihw.shape[1])
    return jnp.einsum("nchw,oc->nohw", y, w2d,
                      precision=jax.lax.Precision.HIGHEST)


if __name__ == "__main__":
    key = jax.random.PRNGKey(0)
    k_x, k_g, k_b, k_w = jax.random.split(key, 4)

    # shapes from the PyTorch module spec: x87 = randn(1, 80, 14, 14)
    N, Cin, H, W = 1, 80, 14, 14
    Cout = 480

    x = jax.random.normal(k_x, (N, Cin, H, W), dtype=jnp.float32)
    gamma = 1.0 + 0.1 * jax.random.normal(k_g, (Cin,), dtype=jnp.float32)
    beta = 0.1 * jax.random.normal(k_b, (Cin,), dtype=jnp.float32)
    w = 0.05 * jax.random.normal(k_w, (Cout, Cin, 1, 1), dtype=jnp.float32)

    out = jax.block_until_ready(bn_conv2d(x, gamma, beta, w))
    assert out.shape == (N, Cout, H, W), out.shape

    ref = _reference(x, gamma, beta, w)
    # bf16 MXU operands (f32 accumulation) -> bf16-appropriate tolerance.
    assert jnp.allclose(out, ref, atol=2e-2, rtol=2e-2), "mismatch vs reference"

    print("KERNEL_OK")
</pallas_src>

<mosaic_0001>
module attributes {stable_mosaic.version = 11 : i64} {
  func.func @bn_conv1x1_kernel(%arg0: memref<1x80x196xf32, #tpu.memory_space<vmem>>, %arg1: memref<80x1xf32, #tpu.memory_space<vmem>>, %arg2: memref<80x1xf32, #tpu.memory_space<vmem>>, %arg3: memref<480x80xbf16, #tpu.memory_space<vmem>>, %arg4: memref<1x480x196xf32, #tpu.memory_space<vmem>>) attributes {dimension_semantics = [], scalar_prefetch = 0 : i64, scratch_operands = 0 : i64, tpu.core_type = #tpu.core_type<tc>} {
    %c0 = arith.constant 0 : index
    %c0_0 = arith.constant 0 : index
    %c0_1 = arith.constant 0 : index
    %0 = vector.load %arg0[%c0, %c0_0, %c0_1] : memref<1x80x196xf32, #tpu.memory_space<vmem>>, vector<1x80x196xf32>
    %cst = arith.constant dense<0.000000e+00> : vector<1x80xf32>
    %1 = vector.multi_reduction <add>, %0, %cst [2] : vector<1x80x196xf32> to vector<1x80xf32>
    %2 = vector.shape_cast %1 : vector<1x80xf32> to vector<1x80x1xf32>
    %cst_2 = arith.constant dense<0.000000e+00> : vector<80x1xf32>
    %3 = vector.multi_reduction <add>, %2, %cst_2 [0] : vector<1x80x1xf32> to vector<80x1xf32>
    %4 = vector.shape_cast %3 : vector<80x1xf32> to vector<1x80x1xf32>
    %cst_3 = arith.constant 0.00510204071 : f32
    %5 = vector.broadcast %cst_3 : f32 to vector<1x80x1xf32>
    %6 = arith.mulf %4, %5 : vector<1x80x1xf32>
    %7 = vector.broadcast %6 : vector<1x80x1xf32> to vector<1x80x196xf32>
    %8 = arith.subf %0, %7 : vector<1x80x196xf32>
    %9 = arith.mulf %8, %8 : vector<1x80x196xf32>
    %cst_4 = arith.constant dense<0.000000e+00> : vector<1x80xf32>
    %10 = vector.multi_reduction <add>, %9, %cst_4 [2] : vector<1x80x196xf32> to vector<1x80xf32>
    %11 = vector.shape_cast %10 : vector<1x80xf32> to vector<1x80x1xf32>
    %cst_5 = arith.constant dense<0.000000e+00> : vector<80x1xf32>
    %12 = vector.multi_reduction <add>, %11, %cst_5 [0] : vector<1x80x1xf32> to vector<80x1xf32>
    %13 = vector.shape_cast %12 : vector<80x1xf32> to vector<1x80x1xf32>
    %cst_6 = arith.constant 0.00510204071 : f32
    %14 = vector.broadcast %cst_6 : f32 to vector<1x80x1xf32>
    %15 = arith.mulf %13, %14 : vector<1x80x1xf32>
    %cst_7 = arith.constant 9.99999974E-6 : f32
    %16 = vector.broadcast %cst_7 : f32 to vector<1x80x1xf32>
    %17 = arith.addf %15, %16 : vector<1x80x1xf32>
    %18 = math.rsqrt %17 : vector<1x80x1xf32>
    %c0_8 = arith.constant 0 : index
    %c0_9 = arith.constant 0 : index
    %19 = vector.load %arg1[%c0_8, %c0_9] : memref<80x1xf32, #tpu.memory_space<vmem>>, vector<80x1xf32>
    %20 = vector.shape_cast %19 : vector<80x1xf32> to vector<1x80x1xf32>
    %21 = arith.mulf %20, %18 : vector<1x80x1xf32>
    %c0_10 = arith.constant 0 : index
    %c0_11 = arith.constant 0 : index
    %22 = vector.load %arg2[%c0_10, %c0_11] : memref<80x1xf32, #tpu.memory_space<vmem>>, vector<80x1xf32>
    %23 = vector.shape_cast %22 : vector<80x1xf32> to vector<1x80x1xf32>
    %24 = vector.broadcast %21 : vector<1x80x1xf32> to vector<1x80x196xf32>
    %25 = arith.mulf %8, %24 : vector<1x80x196xf32>
    %26 = vector.broadcast %23 : vector<1x80x1xf32> to vector<1x80x196xf32>
    %27 = arith.addf %25, %26 : vector<1x80x196xf32>
    %28 = arith.truncf %27 : vector<1x80x196xf32> to vector<1x80x196xbf16>
    %c0_12 = arith.constant 0 : index
    %c0_13 = arith.constant 0 : index
    %29 = vector.load %arg3[%c0_12, %c0_13] : memref<480x80xbf16, #tpu.memory_space<vmem>>, vector<480x80xbf16>
    %30 = vector.shape_cast %28 : vector<1x80x196xbf16> to vector<80x196xbf16>
    %cst_14 = arith.constant dense<0.000000e+00> : vector<480x196xf32>
    %31 = tpu.matmul %29, %30, %cst_14 {dimension_numbers = #tpu.dot_dimension_numbers<[1], [0], [0], [1], [0, 0, 1, 1], [], []>} : vector<480x80xbf16>, vector<80x196xbf16>, vector<480x196xf32> -> vector<480x196xf32>
    %c0_15 = arith.constant 0 : index
    %c0_16 = arith.constant 0 : index
    %c0_17 = arith.constant 0 : index
    %32 = vector.load %arg4[%c0_15, %c0_16, %c0_17] : memref<1x480x196xf32, #tpu.memory_space<vmem>>, vector<1x480x196xf32>
    %33 = vector.shape_cast %32 : vector<1x480x196xf32> to vector<480x196xf32>
    %34 = vector.shape_cast %31 : vector<480x196xf32> to vector<1x480x196xf32>
    tpu.vector_store %arg4[%c0_15, %c0_16, %c0_17], %34 {strides = array<i32>} : memref<1x480x196xf32, #tpu.memory_space<vmem>>, vector<1x480x196xf32>,
    return
  }
}

</mosaic_0001>

<bundles_post_ra>
// kernel: tpu_custom_call.1
= control target key start
LH: loop header
LB: loop body
LE: loop exit
PB: predicated region body
PF: predicated region fallthrough
CT: control target
= control target key end

     0   :  { %vm38_vm0 = vcmask 556032   ;;  %v1280_v40 = vmov 0   ;;  %vm609_vm1 = vcmask 654336   ;;  %s2182_s0 = inlined_call_operand.vmem [shape: f32[1,80,196], index: 0, kind: input, shape index: {}]   ;;  %s2183_s2 = inlined_call_operand.vmem [shape: f32[80,1], index: 2, kind: input, shape index: {}]   ;;  %s2184_s1 = inlined_call_operand.vmem [shape: f32[80,1], index: 1, kind: input, shape index: {}]   ;;  %s2185_s3 = inlined_call_operand.vmem [shape: bf16[480,80], index: 3, kind: input, shape index: {}]   ;;  %s2186_s4 = inlined_call_operand.vmem [shape: f32[1,480,196], index: 4, kind: output, shape index: {}]  }
   0x1   :  { %v18_v0 = vld [vmem:[%s2182_s0] sm:$0xff]  ;;  %v19_v1 = vld [vmem:[%s2182_s0 + $0x8] sm:$0xff]  ;;  %v1322_v5 = vld [vmem:[%s2182_s0 + $0x10] sm:$0xff]  ;;  %1228 = vset.pattern.permute.xlu1 %v1280_v40  ;;  %1229 = vset.pattern.permute.xlu0 %v1280_v40 }
   0x2   :  { %v22_v2 = vld [vmem:[%s2182_s0 + $0x20] sm:$0xff]  ;;  %v39_v3 = vsel %vm38_vm0, %v19_v1, 0.0  ;;  %v23_v4 = vld [vmem:[%s2182_s0 + $0x28] sm:$0xff]  ;;  %v1327_v6 = vld [vmem:[%s2182_s0 + $0x18] sm:$0xff]  ;;  %732 = vmatprep.mubr.bf16.mxu0 %v1280_v40  ;;  %882 = vmatprep.mubr.bf16.mxu1 %v1280_v40 }
   0x3   :  { %v40_v7 = vadd.f32 %v39_v3, %v18_v0  ;;  %v47_v8 = vsel %vm38_vm0, %v23_v4, 0.0  ;;  %v43_v9 = vsel %vm38_vm0, %v1327_v6, 0.0  ;;  %v1335_v10 = vld [vmem:[%s2182_s0 + $0x30] sm:$0xff]  ;;  %v1340_v11 = vld [vmem:[%s2182_s0 + $0x38] sm:$0xff]  ;;  %v1352_v15 = vld [vmem:[%s2182_s0 + $0x48] sm:$0xff] }
   0x4   :  { %v48_v12 = vadd.f32 %v47_v8, %v22_v2  ;;  %v51_v13 = vsel %vm38_vm0, %v1340_v11, 0.0  ;;  %v1347_v14 = vld [vmem:[%s2182_s0 + $0x58] sm:$0xff]  ;;  %v44_v16 = vadd.f32 %v43_v9, %v1322_v5  ;;  %v1359_v18 = vld [vmem:[%s2182_s0 + $0x40] sm:$0xff]  ;;  %v55_v19 = vsel %vm38_vm0, %v1352_v15, 0.0  ;;  %v1366_v20 = vld [vmem:[%s2182_s0 + $0x50] sm:$0xff] }
   0x5   :  { %41 = vadd.xlane.f32.xlu0 %v40_v7  ;;  %v52_v17 = vadd.f32 %v51_v13, %v1335_v10  ;;  %v59_v21 = vsel %vm38_vm0, %v1347_v14, 0.0  ;;  %v1373_v22 = vld [vmem:[%s2182_s0 + $0x68] sm:$0xff]  ;;  %v1378_v23 = vld [vmem:[%s2182_s0 + $0x78] sm:$0xff]  ;;  %v56_v24 = vadd.f32 %v55_v19, %v1359_v18  ;;  %v1385_v26 = vld [vmem:[%s2182_s0 + $0x60] sm:$0xff] }
   0x6   :  { %49 = vadd.xlane.f32.xlu1 %v48_v12  ;;  %v60_v25 = vadd.f32 %v59_v21, %v1366_v20  ;;  %v63_v27 = vsel %vm38_vm0, %v1373_v22, 0.0  ;;  %v1392_v28 = vld [vmem:[%s2182_s0 + $0x70] sm:$0xff]  ;;  %v67_v29 = vsel %vm38_vm0, %v1378_v23, 0.0  ;;  %v1399_v30 = vld [vmem:[%s2182_s0 + $0x88] sm:$0xff]  ;;  %v1404_v31 = vld [vmem:[%s2182_s0 + $0x98] sm:$0xff] }
   0x7   :  { %v64_v32 = vadd.f32 %v63_v27, %v1385_v26  ;;  %v68_v33 = vadd.f32 %v67_v29, %v1392_v28  ;;  %v1411_v34 = vld [vmem:[%s2182_s0 + $0x80] sm:$0xff]  ;;  %v71_v35 = vsel %vm38_vm0, %v1399_v30, 0.0  ;;  %v1418_v36 = vld [vmem:[%s2182_s0 + $0x90] sm:$0xff]  ;;  %v75_v37 = vsel %vm38_vm0, %v1404_v31, 0.0 }
   0x8   :  { %v72_v38 = vadd.f32 %v71_v35, %v1411_v34  ;;  %v76_v39 = vadd.f32 %v75_v37, %v1418_v36 }
   0x9   :  { %45 = vadd.xlane.f32.xlu0 %v44_v16 }
   0xa   :  { %53 = vadd.xlane.f32.xlu1 %v52_v17 }
   0xd   :  { %57 = vadd.xlane.f32.xlu0 %v56_v24 }
   0xe   :  { %61 = vadd.xlane.f32.xlu1 %v60_v25 }
  0x11   :  { %65 = vadd.xlane.f32.xlu0 %v64_v32 }
  0x12   :  { %69 = vadd.xlane.f32.xlu1 %v68_v33 }
  0x15   :  { %73 = vadd.xlane.f32.xlu0 %v72_v38 }
  0x16   :  { %77 = vadd.xlane.f32.xlu1 %v76_v39 }
  0x92   :  { %v42_v41 = vpop.xlane.xlu0 %41 }
  0x93   :  { %v89_v42 = vmul.f32 0.0051020407, %v42_v41  ;;  %v50_v43 = vpop.xlane.xlu1 %49 }
  0x94   :  { %v91_v44 = vmul.f32 0.0051020407, %v50_v43 }
  0x95   :  { %v1428_v45 = vsub.f32 %v18_v0, %v89_v42  ;;  %v1430_v46 = vsub.f32 %v19_v1, %v89_v42 }
  0x96   :  { %v1432_v47 = vsub.f32 %v22_v2, %v91_v44  ;;  %v1434_v48 = vsub.f32 %v23_v4, %v91_v44  ;;  %v46_v49 = vpop.xlane.xlu0 %45 }
  0x97   :  { %v90_v50 = vmul.f32 0.0051020407, %v46_v49  ;;  %v54_v51 = vpop.xlane.xlu1 %53  ;;  %v119_v52 = vmul.f32 %v1428_v45, %v1428_v45  ;;  %v120_v53 = vmul.f32 %v1430_v46, %v1430_v46 }
  0x98   :  { %v92_v54 = vmul.f32 0.0051020407, %v54_v51  ;;  %v123_v55 = vmul.f32 %v1432_v47, %v1432_v47  ;;  %v124_v56 = vmul.f32 %v1434_v48, %v1434_v48 }
  0x99   :  { %v1445_v57 = vsub.f32 %v1322_v5, %v90_v50  ;;  %v1448_v58 = vsub.f32 %v1327_v6, %v90_v50  ;;  %v139_v59 = vsel %vm38_vm0, %v120_v53, 0.0 }
  0x9a   :  { %v1452_v60 = vsub.f32 %v1335_v10, %v92_v54  ;;  %v1455_v61 = vsub.f32 %v1340_v11, %v92_v54  ;;  %v140_v62 = vadd.f32 %v139_v59, %v119_v52  ;;  %v58_v63 = vpop.xlane.xlu0 %57  ;;  %v147_v0 = vsel %vm38_vm0, %v124_v56, 0.0 }
  0x9b   :  { %v62_v1 = vpop.xlane.xlu1 %61  ;;  %v121_v2 = vmul.f32 %v1445_v57, %v1445_v57  ;;  %v122_v3 = vmul.f32 %v1448_v58, %v1448_v58  ;;  %v93_v4 = vmul.f32 0.0051020407, %v58_v63  ;;  %v148_v6 = vadd.f32 %v147_v0, %v123_v55 }
  0x9c   :  { %141 = vadd.xlane.f32.xlu0 %v140_v62  ;;  %v94_v5 = vmul.f32 0.0051020407, %v62_v1  ;;  %v125_v7 = vmul.f32 %v1452_v60, %v1452_v60  ;;  %v126_v8 = vmul.f32 %v1455_v61, %v1455_v61 }
  0x9d   :  { %v143_v9 = vsel %vm38_vm0, %v122_v3, 0.0  ;;  %v1468_v10 = vsub.f32 %v1359_v18, %v93_v4  ;;  %v1471_v11 = vsub.f32 %v1352_v15, %v93_v4  ;;  %v244_v3 = vld [vmem:[%s2183_s2 + $0x28] sm:$0xff] }
  0x9e   :  { %v1474_v12 = vsub.f32 %v1366_v20, %v94_v5  ;;  %v1477_v13 = vsub.f32 %v1347_v14, %v94_v5  ;;  %v144_v16 = vadd.f32 %v143_v9, %v121_v2  ;;  %v151_v17 = vsel %vm38_vm0, %v126_v8, 0.0  ;;  %v66_v19 = vpop.xlane.xlu0 %65  ;;  %v239_v2 = vld [vmem:[%s2183_s2] sm:$0xff]  ;;  %v240_v4 = vld [vmem:[%s2183_s2 + $0x8] sm:$0xff]  ;;  %v241_v5 = vld [vmem:[%s2183_s2 + $0x10] sm:$0xff] }
  0x9f   :  { %v70_v21 = vpop.xlane.xlu1 %69  ;;  %v95_v24 = vmul.f32 0.0051020407, %v66_v19  ;;  %v127_v25 = vmul.f32 %v1468_v10, %v1468_v10  ;;  %v128_v18 = vmul.f32 %v1471_v11, %v1471_v11  ;;  %v152_v20 = vadd.f32 %v151_v17, %v125_v7  ;;  %v243_v7 = vld [vmem:[%s2183_s2 + $0x20] sm:$0xff]  ;;  %v245_v8 = vld [vmem:[%s2183_s2 + $0x30] sm:$0xff] }
  0xa0   :  { %145 = vadd.xlane.f32.xlu1 %v144_v16  ;;  %v96_v15 = vmul.f32 0.0051020407, %v70_v21  ;;  %149 = vadd.xlane.f32.xlu0 %v148_v6  ;;  %v129_v14 = vmul.f32 %v1474_v12, %v1474_v12  ;;  %v130_v27 = vmul.f32 %v1477_v13, %v1477_v13  ;;  %v242_v6 = vld [vmem:[%s2183_s2 + $0x18] sm:$0xff] }
  0xa1   :  { %v1489_v29 = vsub.f32 %v1385_v26, %v95_v24  ;;  %v1492_v32 = vsub.f32 %v1373_v22, %v95_v24  ;;  %v155_v33 = vsel %vm38_vm0, %v128_v18, 0.0 }
  0xa2   :  { %v1496_v35 = vsub.f32 %v1392_v28, %v96_v15  ;;  %v1499_v37 = vsub.f32 %v1378_v23, %v96_v15  ;;  %v159_v38 = vsel %vm38_vm0, %v130_v27, 0.0  ;;  %v74_v39 = vpop.xlane.xlu0 %73  ;;  %v156_v41 = vadd.f32 %v155_v33, %v127_v25 }
  0xa3   :  { %v78_v42 = vpop.xlane.xlu1 %77  ;;  %v97_v43 = vmul.f32 0.0051020407, %v74_v39  ;;  %v131_v26 = vmul.f32 %v1489_v29, %v1489_v29  ;;  %v132_v22 = vmul.f32 %v1492_v32, %v1492_v32  ;;  %v160_v49 = vadd.f32 %v159_v38, %v129_v14 }
  0xa4   :  { %153 = vadd.xlane.f32.xlu1 %v152_v20  ;;  %v98_v44 = vmul.f32 0.0051020407, %v78_v42  ;;  %157 = vadd.xlane.f32.xlu0 %v156_v41  ;;  %v133_v23 = vmul.f32 %v1496_v35, %v1496_v35  ;;  %v134_v28 = vmul.f32 %v1499_v37, %v1499_v37 }
  0xa5   :  { %v1511_v50 = vsub.f32 %v1411_v34, %v97_v43  ;;  %v1514_v51 = vsub.f32 %v1399_v30, %v97_v43  ;;  %v163_v52 = vsel %vm38_vm0, %v132_v22, 0.0 }
  0xa6   :  { %v1518_v53 = vsub.f32 %v1418_v36, %v98_v44  ;;  %v1521_v54 = vsub.f32 %v1404_v31, %v98_v44  ;;  %v167_v55 = vsel %vm38_vm0, %v134_v28, 0.0  ;;  %v164_v56 = vadd.f32 %v163_v52, %v131_v26  ;;  %v219_v26 = vld [vmem:[%s2184_s1] sm:$0xff] }
  0xa7   :  { %v135_v59 = vmul.f32 %v1511_v50, %v1511_v50  ;;  %v136_v34 = vmul.f32 %v1514_v51, %v1514_v51  ;;  %v168_v30 = vadd.f32 %v167_v55, %v133_v23 }
  0xa8   :  { %161 = vadd.xlane.f32.xlu1 %v160_v49  ;;  %165 = vadd.xlane.f32.xlu0 %v164_v56  ;;  %v137_v62 = vmul.f32 %v1518_v53, %v1518_v53  ;;  %v138_v36 = vmul.f32 %v1521_v54, %v1521_v54 }
  0xa9   :  { %v171_v31 = vsel %vm38_vm0, %v136_v34, 0.0 }
  0xaa   :  { %v175_v63 = vsel %vm38_vm0, %v138_v36, 0.0  ;;  %v172_v0 = vadd.f32 %v171_v31, %v135_v59  ;;  %v220_v59 = vld [vmem:[%s2184_s1 + $0x8] sm:$0xff]  ;;  %v246_v36 = vld [vmem:[%s2183_s2 + $0x38] sm:$0xff]  ;;  %v221_v31 = vld [vmem:[%s2184_s1 + $0x10] sm:$0xff] }
  0xab   :  { %v176_v1 = vadd.f32 %v175_v63, %v137_v62 }
  0xac   :  { %169 = vadd.xlane.f32.xlu1 %v168_v30  ;;  %173 = vadd.xlane.f32.xlu0 %v172_v0 }
  0xb0   :  { %177 = vadd.xlane.f32.xlu1 %v176_v1 }
  0xc1   :  { %321 = vperm.xlu1 %1228, %v239_v2  }
  0xc2   :  { %346 = vperm.xlu0 %1229, %v244_v3  }
  0xc5   :  { %326 = vperm.xlu1 %1228, %v240_v4  }
  0xc9   :  { %331 = vperm.xlu1 %1228, %v241_v5  }
  0xcd   :  { %336 = vperm.xlu1 %1228, %v242_v6  }
  0xd1   :  { %341 = vperm.xlu1 %1228, %v243_v7   ;;  %v222_v7 = vld [vmem:[%s2184_s1 + $0x18] sm:$0xff] }
  0xd5   :  { %351 = vperm.xlu1 %1228, %v245_v8   ;;  %v224_v8 = vld [vmem:[%s2184_s1 + $0x28] sm:$0xff] }
 0x129   :  { %v142_v9 = vpop.xlane.xlu0 %141 }
 0x12a   :  { %v189_v16 = vmul.f32 0.0051020407, %v142_v9 }
 0x12c   :  { %v199_v17 = vadd.f32 1e-05, %v189_v16 }
 0x12d   :  { %v146_v19 = vpop.xlane.xlu1 %145  ;;  %v150_v21 = vpop.xlane.xlu0 %149 }
 0x12e   :  { %1260 = vrsqrt.f32 %v199_v17  ;;  %v190_v24 = vmul.f32 0.0051020407, %v146_v19  ;;  %v191_v25 = vmul.f32 0.0051020407, %v150_v21  ;;  %v223_v19 = vld [vmem:[%s2184_s1 + $0x20] sm:$0xff] }
 0x130   :  { %v200_v18 = vadd.f32 1e-05, %v190_v24  ;;  %v201_v15 = vadd.f32 1e-05, %v191_v25  ;;  %v226_v24 = vld [vmem:[%s2184_s1 + $0x38] sm:$0xff] }
 0x131   :  { %v154_v20 = vpop.xlane.xlu1 %153  ;;  %v158_v14 = vpop.xlane.xlu0 %157 }
 0x132   :  { %1262 = vrsqrt.f32 %v200_v18  ;;  %v192_v27 = vmul.f32 0.0051020407, %v154_v20  ;;  %v193_v33 = vmul.f32 0.0051020407, %v158_v14  ;;  %v225_v20 = vld [vmem:[%s2184_s1 + $0x30] sm:$0xff] }
 0x133   :  { %1264 = vrsqrt.f32 %v201_v15 }
 0x134   :  { %v202_v38 = vadd.f32 1e-05, %v192_v27  ;;  %v203_v41 = vadd.f32 1e-05, %v193_v33  ;;  %v228_v27 = vld [vmem:[%s2184_s1 + $0x48] sm:$0xff] }
 0x135   :  { %v162_v39 = vpop.xlane.xlu1 %161  ;;  %v166_v42 = vpop.xlane.xlu0 %165 }
 0x136   :  { %1266 = vrsqrt.f32 %v202_v38  ;;  %v194_v43 = vmul.f32 0.0051020407, %v162_v39  ;;  %v195_v22 = vmul.f32 0.0051020407, %v166_v42 }
 0x137   :  { %1268 = vrsqrt.f32 %v203_v41  ;;  %v227_v41 = vld [vmem:[%s2184_s1 + $0x40] sm:$0xff] }
 0x138   :  { %v1261_v44 = vpop.eup %1260  ;;  %v204_v49 = vadd.f32 1e-05, %v194_v43  ;;  %v205_v52 = vadd.f32 1e-05, %v195_v22  ;;  %v247_v22 = vld [vmem:[%s2183_s2 + $0x40] sm:$0xff] }
 0x139   :  { %v170_v23 = vpop.xlane.xlu1 %169  ;;  %v229_v28 = vmul.f32 %v1261_v44, %v219_v26  ;;  %v174_v55 = vpop.xlane.xlu0 %173  ;;  %v248_v26 = vld [vmem:[%s2183_s2 + $0x48] sm:$0xff] }
 0x13a   :  { %1270 = vrsqrt.f32 %v204_v49  ;;  %v196_v56 = vmul.f32 0.0051020407, %v170_v23  ;;  %v197_v34 = vmul.f32 0.0051020407, %v174_v55 }
 0x13b   :  { %251 = vperm.xlu0 %1229, %v229_v28   ;;  %1272 = vrsqrt.f32 %v205_v52 }
 0x13c   :  { %v1263_v30 = vpop.eup %1262  ;;  %v206_v62 = vadd.f32 1e-05, %v196_v56  ;;  %v207_v2 = vadd.f32 1e-05, %v197_v34 }
 0x13d   :  { %v1265_v63 = vpop.eup %1264  ;;  %v178_v0 = vpop.xlane.xlu1 %177  ;;  %v230_v1 = vmul.f32 %v1263_v30, %v220_v59 }
 0x13e   :  { %1274 = vrsqrt.f32 %v206_v62  ;;  %v198_v3 = vmul.f32 0.0051020407, %v178_v0  ;;  %v231_v4 = vmul.f32 %v1265_v63, %v221_v31 }
 0x13f   :  { %256 = vperm.xlu1 %1228, %v230_v1   ;;  %356 = vperm.xlu0 %1229, %v246_v36   ;;  %1276 = vrsqrt.f32 %v207_v2 }
 0x140   :  { %v1267_v5 = vpop.eup %1266  ;;  %v208_v6 = vadd.f32 1e-05, %v198_v3 }
 0x141   :  { %v1269_v9 = vpop.eup %1268  ;;  %v232_v16 = vmul.f32 %v1267_v5, %v222_v7  ;;  %v322_v44 = vpop.permute.xlu1 %321 }
 0x142   :  { %1278 = vrsqrt.f32 %v208_v6  ;;  %v233_v18 = vmul.f32 %v1269_v9, %v223_v19  ;;  %v347_v55 = vpop.permute.xlu0 %346 }
 0x143   :  { %261 = vperm.xlu1 %1228, %v231_v4  }
 0x144   :  { %v1271_v17 = vpop.eup %1270 }
 0x145   :  { %v234_v21 = vmul.f32 %v1271_v17, %v224_v8  ;;  %v1273_v25 = vpop.eup %1272  ;;  %v327_v49 = vpop.permute.xlu1 %326 }
 0x146   :  { %v235_v38 = vmul.f32 %v1273_v25, %v225_v20 }
 0x147   :  { %276 = vperm.xlu0 %1229, %v234_v21   ;;  %266 = vperm.xlu1 %1228, %v232_v16  }
 0x148   :  { %v1275_v15 = vpop.eup %1274 }
 0x149   :  { %v236_v14 = vmul.f32 %v1275_v15, %v226_v24  ;;  %v1277_v33 = vpop.eup %1276  ;;  %v332_v23 = vpop.permute.xlu1 %331 }
 0x14a   :  { %v237_v43 = vmul.f32 %v1277_v33, %v227_v41 }
 0x14b   :  { %286 = vperm.xlu0 %1229, %v236_v14   ;;  %271 = vperm.xlu1 %1228, %v233_v18  }
 0x14c   :  { %v1279_v39 = vpop.eup %1278 }
 0x14d   :  { %v238_v42 = vmul.f32 %v1279_v39, %v228_v27  ;;  %v337_v28 = vpop.permute.xlu1 %336 }
 0x14f   :  { %296 = vperm.xlu0 %1229, %v238_v42   ;;  %281 = vperm.xlu1 %1228, %v235_v38  }
 0x151   :  { %v342_v52 = vpop.permute.xlu1 %341 }
 0x153   :  { %366 = vperm.xlu0 %1229, %v248_v26   ;;  %291 = vperm.xlu1 %1228, %v237_v43  }
 0x155   :  { %v352_v56 = vpop.permute.xlu1 %351 }
 0x157   :  { %361 = vperm.xlu1 %1228, %v247_v22  }
 0x1ba   :  { %v252_v59 = vpop.permute.xlu0 %251 }
 0x1bb   :  { %v299_v34 = vmul.f32 %v252_v59, %v1428_v45  ;;  %v300_v30 = vmul.f32 %v252_v59, %v1430_v46 }
 0x1bd   :  { %v370_v63 = vadd.f32 %v322_v44, %v300_v30  ;;  %v369_v1 = vadd.f32 %v322_v44, %v299_v34 }
 0x1be   :  { %v257_v62 = vpop.permute.xlu1 %256  ;;  %v357_v3 = vpop.permute.xlu0 %356 }
 0x1bf   :  { %v301_v36 = vmul.f32 %v257_v62, %v1445_v57  ;;  %v302_v31 = vmul.f32 %v257_v62, %v1448_v58 }
 0x1c1   :  { %v372_v0 = vadd.f32 %v327_v49, %v302_v31  ;;  %v371_v2 = vadd.f32 %v327_v49, %v301_v36  ;;  %v1234_v36 = vld [vmem:[%s2185_s3 + $0x10] sm:$0xff]   ;;  %v1235_v31 = vld [vmem:[%s2185_s3 + $0x88] sm:$0xff]  }
 0x1c2   :  { %v262_v4 = vpop.permute.xlu1 %261 }
 0x1c3   :  { %v390_v5 = vpack.c.bf16 %v372_v0, %v370_v63  ;;  %v389_v6 = vpack.c.bf16 %v371_v2, %v369_v1  ;;  %v303_v7 = vmul.f32 %v262_v4, %v1432_v47  ;;  %v304_v45 = vmul.f32 %v262_v4, %v1434_v48  ;;  %v1236_v63 = vld [vmem:[%s2185_s3 + $0x18] sm:$0xff]   ;;  %v1237_v0 = vld [vmem:[%s2185_s3 + $0x90] sm:$0xff]   ;;  %v1238_v1 = vld [vmem:[%s2185_s3 + $0x20] sm:$0xff]  }
 0x1c4   :  { %v1239_v2 = vld [vmem:[%s2185_s3 + $0x98] sm:$0xff]   ;;  %v1241_v4 = vld [vmem:[%s2185_s3 + $0xa0] sm:$0xff]  }
 0x1c5   :  { %700 = vmatprep.subr.bf16.mxu0 %v390_v5  ;;  %1217 = vmatprep.subr.bf16.mxu1 %v390_v5  ;;  %v373_v19 = vadd.f32 %v332_v23, %v303_v7  ;;  %v374_v21 = vadd.f32 %v332_v23, %v304_v45  ;;  %v1242_v5 = vld [vmem:[%s2185_s3 + $0x30] sm:$0xff]   ;;  %v1244_v7 = vld [vmem:[%s2185_s3 + $0x38] sm:$0xff]  }
 0x1c6   :  { %v267_v46 = vpop.permute.xlu1 %266  ;;  %701 = vmatpush1.bf16.msra.mxu0 %v389_v6  ;;  %1222 = vmatpush1.bf16.msra.mxu1 %v389_v6  ;;  %v277_v57 = vpop.permute.xlu0 %276  ;;  %v1243_v6 = vld [vmem:[%s2185_s3 + $0xa8] sm:$0xff]   ;;  %v1245_v45 = vld [vmem:[%s2185_s3 + $0xb0] sm:$0xff]  }
 0x1c7   :  { %v305_v58 = vmul.f32 %v267_v46, %v1452_v60  ;;  %v306_v8 = vmul.f32 %v267_v46, %v1455_v61  ;;  %v309_v17 = vmul.f32 %v277_v57, %v1474_v12  ;;  %v310_v24 = vmul.f32 %v277_v57, %v1477_v13  ;;  %v1246_v46 = vld [vmem:[%s2185_s3 + $0x40] sm:$0xff]   ;;  %v1247_v57 = vld [vmem:[%s2185_s3 + $0xb8] sm:$0xff]  }
 0x1c9   :  { %v375_v9 = vadd.f32 %v337_v28, %v305_v58  ;;  %v376_v16 = vadd.f32 %v337_v28, %v306_v8  ;;  %v379_v14 = vadd.f32 %v347_v55, %v309_v17  ;;  %v380_v61 = vadd.f32 %v347_v55, %v310_v24  ;;  %v1248_v58 = vld [vmem:[%s2185_s3 + $0x48] sm:$0xff]   ;;  %v1249_v8 = vld [vmem:[%s2185_s3 + $0xc0] sm:$0xff]   ;;  %v1252_v17 = vld [vmem:[%s2185_s3 + $0x58] sm:$0xff]  }
 0x1ca   :  { %v272_v25 = vpop.permute.xlu1 %271  ;;  %v287_v47 = vpop.permute.xlu0 %286  ;;  %v1255_v24 = vld [vmem:[%s2185_s3 + $0xd8] sm:$0xff]  }
 0x1cb   :  { %v307_v48 = vmul.f32 %v272_v25, %v1468_v10  ;;  %v308_v18 = vmul.f32 %v272_v25, %v1471_v11  ;;  %v392_v15 = vpack.c.bf16 %v376_v16, %v374_v21  ;;  %v391_v20 = vpack.c.bf16 %v375_v9, %v373_v19  ;;  %v1250_v9 = vld [vmem:[%s2185_s3 + $0x50] sm:$0xff]   ;;  %v1251_v16 = vld [vmem:[%s2185_s3 + $0xc8] sm:$0xff]   ;;  %v1254_v21 = vld [vmem:[%s2185_s3 + $0x60] sm:$0xff]  }
 0x1cc   :  { %v313_v33 = vmul.f32 %v287_v47, %v1496_v35  ;;  %v314_v12 = vmul.f32 %v287_v47, %v1499_v37  ;;  %v1253_v19 = vld [vmem:[%s2185_s3 + $0xd0] sm:$0xff]   ;;  %v1256_v25 = vld [vmem:[%s2185_s3 + $0x68] sm:$0xff]   ;;  %v1257_v47 = vld [vmem:[%s2185_s3 + $0xe0] sm:$0xff]  }
 0x1cd   :  { %v377_v60 = vadd.f32 %v342_v52, %v307_v48  ;;  %v378_v27 = vadd.f32 %v342_v52, %v308_v18  ;;  %702 = vmatprep.subr.bf16.mxu0 %v392_v15  ;;  %1218 = vmatprep.subr.bf16.mxu1 %v392_v15  ;;  %v1258_v48 = vld [vmem:[%s2185_s3 + $0x70] sm:$0xff]   ;;  %v1259_v18 = vld [vmem:[%s2185_s3 + $0xe8] sm:$0xff]  }
 0x1ce   :  { %v282_v38 = vpop.permute.xlu1 %281  ;;  %v297_v13 = vpop.permute.xlu0 %296  ;;  %703 = vmatpush1.bf16.msra.mxu0 %v391_v20  ;;  %1223 = vmatpush1.bf16.msra.mxu1 %v391_v20  ;;  %v383_v26 = vadd.f32 %v357_v3, %v313_v33  ;;  %v384_v22 = vadd.f32 %v357_v3, %v314_v12  ;;  %v1240_v3 = vld [vmem:[%s2185_s3 + $0x28] sm:$0xff]  }
 0x1cf   :  { %v311_v39 = vmul.f32 %v282_v38, %v1489_v29  ;;  %v312_v10 = vmul.f32 %v282_v38, %v1492_v32  ;;  %v394_v11 = vpack.c.bf16 %v380_v61, %v378_v27  ;;  %v393_v41 = vpack.c.bf16 %v379_v14, %v377_v60 }
 0x1d0   :  { %v317_v44 = vmul.f32 %v297_v13, %v1518_v53  ;;  %v318_v32 = vmul.f32 %v297_v13, %v1521_v54  ;;  %v1230_v53 = vld [vmem:[%s2185_s3] sm:$0xff]  }
 0x1d1   :  { %v381_v42 = vadd.f32 %v352_v56, %v311_v39  ;;  %v382_v43 = vadd.f32 %v352_v56, %v312_v10  ;;  %704 = vmatprep.subr.bf16.mxu0 %v394_v11  ;;  %1219 = vmatprep.subr.bf16.mxu1 %v394_v11  ;;  %v1233_v54 = vld [vmem:[%s2185_s3 + $0x80] sm:$0xff]  }
 0x1d2   :  { %v292_v35 = vpop.permute.xlu1 %291  ;;  %705 = vmatpush1.bf16.msra.mxu0 %v393_v41  ;;  %1224 = vmatpush1.bf16.msra.mxu1 %v393_v41  ;;  %v367_v37 = vpop.permute.xlu0 %366 }
 0x1d3   :  { %v396_v49 = vpack.c.bf16 %v384_v22, %v382_v43  ;;  %v395_v29 = vpack.c.bf16 %v383_v26, %v381_v42  ;;  %v315_v23 = vmul.f32 %v292_v35, %v1511_v50  ;;  %v316_v28 = vmul.f32 %v292_v35, %v1514_v51  ;;  %v1231_v50 = vld [vmem:[%s2185_s3 + $0x78] sm:$0xff]   ;;  %v1232_v51 = vld [vmem:[%s2185_s3 + $0x8] sm:$0xff]  }
 0x1d4   :  { %v387_v52 = vadd.f32 %v367_v37, %v317_v44  ;;  %v388_v56 = vadd.f32 %v367_v37, %v318_v32 }
 0x1d5   :  { %706 = vmatprep.subr.bf16.mxu0 %v396_v49  ;;  %1220 = vmatprep.subr.bf16.mxu1 %v396_v49 }
 0x1d6   :  { %v362_v55 = vpop.permute.xlu1 %361  ;;  %707 = vmatpush1.bf16.msra.mxu0 %v395_v29  ;;  %1225 = vmatpush1.bf16.msra.mxu1 %v395_v29 }
 0x1d7   :  { %v385_v59 = vadd.f32 %v362_v55, %v315_v23  ;;  %v386_v34 = vadd.f32 %v362_v55, %v316_v28 }
 0x1d9   :  { %v397_v30 = vpack.c.bf16 %v387_v52, %v385_v59  ;;  %v398_v62 = vpack.c.bf16 %v388_v56, %v386_v34 }
 0x1db   :  { %708 = vmatprep.subr.bf16.mxu0 %v398_v62  ;;  %1221 = vmatprep.subr.bf16.mxu1 %v398_v62 }
 0x1dc   :  { %709 = vmatpush1.bf16.msra.mxu0 %v397_v30  ;;  %1226 = vmatpush1.bf16.msra.mxu1 %v397_v30 }
 0x1df   :  { %1187 = vmatmul.mubr.msk.bf16.vlgmr.msra.gmra.mrb[0].mxu0 %vm609_vm1, %v1230_v53  ;;  %1202 = vmatmul.mubr.msk.bf16.vlgmr.msra.gmra.mrb[0].mxu1 %vm609_vm1, %v1231_v50 }
 0x1e0   :  { %742 = vmatprep.mubr.bf16.mxu0 %v1280_v40  ;;  %892 = vmatprep.mubr.bf16.mxu1 %v1280_v40 }
 0x1e7   :  { %1188 = vmatmul.mubr.msk.bf16.gmra.mrb[4].mxu0 %vm609_vm1, %v1232_v51  ;;  %1203 = vmatmul.mubr.msk.bf16.gmra.mrb[4].mxu1 %vm609_vm1, %v1233_v54 }
 0x1e8   :  { %752 = vmatprep.mubr.bf16.mxu0 %v1280_v40  ;;  %902 = vmatprep.mubr.bf16.mxu1 %v1280_v40 }
 0x1ef   :  { %1189 = vmatmul.mubr.msk.bf16.gmra.mrb[8].mxu0 %vm609_vm1, %v1234_v36  ;;  %1204 = vmatmul.mubr.msk.bf16.gmra.mrb[8].mxu1 %vm609_vm1, %v1235_v31 }
 0x1f0   :  { %762 = vmatprep.mubr.bf16.mxu0 %v1280_v40  ;;  %912 = vmatprep.mubr.bf16.mxu1 %v1280_v40 }
 0x1f7   :  { %1190 = vmatmul.mubr.msk.bf16.gmra.mrb[12].mxu0 %vm609_vm1, %v1236_v63  ;;  %1205 = vmatmul.mubr.msk.bf16.gmra.mrb[12].mxu1 %vm609_vm1, %v1237_v0 }
 0x1f8   :  { %772 = vmatprep.mubr.bf16.mxu0 %v1280_v40  ;;  %922 = vmatprep.mubr.bf16.mxu1 %v1280_v40 }
 0x1ff   :  { %1191 = vmatmul.mubr.msk.bf16.gmra.mrb[16].mxu0 %vm609_vm1, %v1238_v1  ;;  %1206 = vmatmul.mubr.msk.bf16.gmra.mrb[16].mxu1 %vm609_vm1, %v1239_v2 }
 0x200   :  { %782 = vmatprep.mubr.bf16.mxu0 %v1280_v40  ;;  %932 = vmatprep.mubr.bf16.mxu1 %v1280_v40 }
 0x207   :  { %1192 = vmatmul.mubr.msk.bf16.gmra.mrb[20].mxu0 %vm609_vm1, %v1240_v3  ;;  %1207 = vmatmul.mubr.msk.bf16.gmra.mrb[20].mxu1 %vm609_vm1, %v1241_v4 }
 0x208   :  { %792 = vmatprep.mubr.bf16.mxu0 %v1280_v40  ;;  %942 = vmatprep.mubr.bf16.mxu1 %v1280_v40 }
 0x20f   :  { %1193 = vmatmul.mubr.msk.bf16.gmra.mrb[24].mxu0 %vm609_vm1, %v1242_v5  ;;  %1208 = vmatmul.mubr.msk.bf16.gmra.mrb[24].mxu1 %vm609_vm1, %v1243_v6 }
 0x210   :  { %802 = vmatprep.mubr.bf16.mxu0 %v1280_v40  ;;  %952 = vmatprep.mubr.bf16.mxu1 %v1280_v40 }
 0x217   :  { %1194 = vmatmul.mubr.msk.bf16.gmra.mrb[28].mxu0 %vm609_vm1, %v1244_v7  ;;  %1209 = vmatmul.mubr.msk.bf16.gmra.mrb[28].mxu1 %vm609_vm1, %v1245_v45 }
 0x218   :  { %812 = vmatprep.mubr.bf16.mxu0 %v1280_v40  ;;  %962 = vmatprep.mubr.bf16.mxu1 %v1280_v40 }
 0x21f   :  { %1195 = vmatmul.mubr.msk.bf16.gmra.mrb[32].mxu0 %vm609_vm1, %v1246_v46  ;;  %1210 = vmatmul.mubr.msk.bf16.gmra.mrb[32].mxu1 %vm609_vm1, %v1247_v57 }
 0x220   :  { %822 = vmatprep.mubr.bf16.mxu0 %v1280_v40  ;;  %972 = vmatprep.mubr.bf16.mxu1 %v1280_v40 }
 0x227   :  { %1196 = vmatmul.mubr.msk.bf16.gmra.mrb[36].mxu0 %vm609_vm1, %v1248_v58  ;;  %1211 = vmatmul.mubr.msk.bf16.gmra.mrb[36].mxu1 %vm609_vm1, %v1249_v8 }
 0x228   :  { %832 = vmatprep.mubr.bf16.mxu0 %v1280_v40  ;;  %982 = vmatprep.mubr.bf16.mxu1 %v1280_v40 }
 0x22f   :  { %1197 = vmatmul.mubr.msk.bf16.gmra.mrb[40].mxu0 %vm609_vm1, %v1250_v9  ;;  %1212 = vmatmul.mubr.msk.bf16.gmra.mrb[40].mxu1 %vm609_vm1, %v1251_v16 }
 0x230   :  { %842 = vmatprep.mubr.bf16.mxu0 %v1280_v40  ;;  %992 = vmatprep.mubr.bf16.mxu1 %v1280_v40 }
 0x237   :  { %1198 = vmatmul.mubr.msk.bf16.gmra.mrb[44].mxu0 %vm609_vm1, %v1252_v17  ;;  %1213 = vmatmul.mubr.msk.bf16.gmra.mrb[44].mxu1 %vm609_vm1, %v1253_v19 }
 0x238   :  { %852 = vmatprep.mubr.bf16.mxu0 %v1280_v40  ;;  %1002 = vmatprep.mubr.bf16.mxu1 %v1280_v40 }
 0x23f   :  { %1199 = vmatmul.mubr.msk.bf16.gmra.mrb[48].mxu0 %vm609_vm1, %v1254_v21  ;;  %1214 = vmatmul.mubr.msk.bf16.gmra.mrb[48].mxu1 %vm609_vm1, %v1255_v24 }
 0x240   :  { %862 = vmatprep.mubr.bf16.mxu0 %v1280_v40  ;;  %1012 = vmatprep.mubr.bf16.mxu1 %v1280_v40 }
 0x247   :  { %1200 = vmatmul.mubr.msk.bf16.gmra.mrb[52].mxu0 %vm609_vm1, %v1256_v25  ;;  %1215 = vmatmul.mubr.msk.bf16.gmra.mrb[52].mxu1 %vm609_vm1, %v1257_v47 }
 0x248   :  { %872 = vmatprep.mubr.bf16.mxu0 %v1280_v40  ;;  %1022 = vmatprep.mubr.bf16.mxu1 %v1280_v40 }
 0x24f   :  { %1201 = vmatmul.mubr.msk.bf16.gmra.mrb[56].mxu0 %vm609_vm1, %v1258_v48  ;;  %1216 = vmatmul.mubr.msk.bf16.gmra.mrb[56].mxu1 %vm609_vm1, %v1259_v18 }
 0x2b2   :  { %v734_v15 = vpop.f32.mrb[0].mxu0  ;;  %v884_v20 = vpop.f32.mrb[0].mxu1 }
 0x2b3   :  { %1033 = vst [vmem:[%s2186_s4] sm:$0xff] %v734_v15  ;;  %1093 = vst [vmem:[%s2186_s4 + $0x1e0] sm:$0xff] %v884_v20  ;;  %v736_v40 = vpop.f32.mrb[1].mxu0  ;;  %v886_v14 = vpop.f32.mrb[1].mxu1 }
 0x2b4   :  { %1034 = vst.msk [vmem:[%s2186_s4 + $0x8] sm:$0xff] %vm38_vm0, %v736_v40  ;;  %1094 = vst.msk [vmem:[%s2186_s4 + $0x1e8] sm:$0xff] %vm38_vm0, %v886_v14  ;;  %v738_v60 = vpop.f32.mrb[2].mxu0  ;;  %v888_v27 = vpop.f32.mrb[2].mxu1 }
 0x2b5   :  { %1035 = vst [vmem:[%s2186_s4 + $0x10] sm:$0xff] %v738_v60  ;;  %1095 = vst [vmem:[%s2186_s4 + $0x1f0] sm:$0xff] %v888_v27  ;;  %v740_v61 = vpop.f32.mrb[3].mxu0  ;;  %v890_v33 = vpop.f32.mrb[3].mxu1 }
 0x2b6   :  { %1036 = vst.msk [vmem:[%s2186_s4 + $0x18] sm:$0xff] %vm38_vm0, %v740_v61  ;;  %1096 = vst.msk [vmem:[%s2186_s4 + $0x1f8] sm:$0xff] %vm38_vm0, %v890_v33 }
 0x2ba   :  { %v744_v12 = vpop.f32.mrb[4].mxu0  ;;  %v894_v38 = vpop.f32.mrb[4].mxu1 }
 0x2bb   :  { %1037 = vst [vmem:[%s2186_s4 + $0x20] sm:$0xff] %v744_v12  ;;  %1097 = vst [vmem:[%s2186_s4 + $0x200] sm:$0xff] %v894_v38  ;;  %v746_v13 = vpop.f32.mrb[5].mxu0  ;;  %v896_v39 = vpop.f32.mrb[5].mxu1 }
 0x2bc   :  { %1038 = vst.msk [vmem:[%s2186_s4 + $0x28] sm:$0xff] %vm38_vm0, %v746_v13  ;;  %1098 = vst.msk [vmem:[%s2186_s4 + $0x208] sm:$0xff] %vm38_vm0, %v896_v39  ;;  %v748_v10 = vpop.f32.mrb[6].mxu0  ;;  %v898_v11 = vpop.f32.mrb[6].mxu1 }
 0x2bd   :  { %1039 = vst [vmem:[%s2186_s4 + $0x30] sm:$0xff] %v748_v10  ;;  %1099 = vst [vmem:[%s2186_s4 + $0x210] sm:$0xff] %v898_v11  ;;  %v750_v41 = vpop.f32.mrb[7].mxu0  ;;  %v900_v42 = vpop.f32.mrb[7].mxu1 }
 0x2be   :  { %1040 = vst.msk [vmem:[%s2186_s4 + $0x38] sm:$0xff] %vm38_vm0, %v750_v41  ;;  %1100 = vst.msk [vmem:[%s2186_s4 + $0x218] sm:$0xff] %vm38_vm0, %v900_v42 }
 0x2c2   :  { %v754_v43 = vpop.f32.mrb[8].mxu0  ;;  %v904_v26 = vpop.f32.mrb[8].mxu1 }
 0x2c3   :  { %1041 = vst [vmem:[%s2186_s4 + $0x40] sm:$0xff] %v754_v43  ;;  %1101 = vst [vmem:[%s2186_s4 + $0x220] sm:$0xff] %v904_v26  ;;  %v756_v22 = vpop.f32.mrb[9].mxu0  ;;  %v906_v35 = vpop.f32.mrb[9].mxu1 }
 0x2c4   :  { %1042 = vst.msk [vmem:[%s2186_s4 + $0x48] sm:$0xff] %vm38_vm0, %v756_v22  ;;  %1102 = vst.msk [vmem:[%s2186_s4 + $0x228] sm:$0xff] %vm38_vm0, %v906_v35  ;;  %v758_v37 = vpop.f32.mrb[10].mxu0  ;;  %v908_v44 = vpop.f32.mrb[10].mxu1 }
 0x2c5   :  { %1043 = vst [vmem:[%s2186_s4 + $0x50] sm:$0xff] %v758_v37  ;;  %1103 = vst [vmem:[%s2186_s4 + $0x230] sm:$0xff] %v908_v44  ;;  %v760_v49 = vpop.f32.mrb[11].mxu0  ;;  %v910_v29 = vpop.f32.mrb[11].mxu1 }
 0x2c6   :  { %1044 = vst.msk [vmem:[%s2186_s4 + $0x58] sm:$0xff] %vm38_vm0, %v760_v49  ;;  %1104 = vst.msk [vmem:[%s2186_s4 + $0x238] sm:$0xff] %vm38_vm0, %v910_v29 }
 0x2ca   :  { %v764_v32 = vpop.f32.mrb[12].mxu0  ;;  %v914_v23 = vpop.f32.mrb[12].mxu1 }
 0x2cb   :  { %1045 = vst [vmem:[%s2186_s4 + $0x60] sm:$0xff] %v764_v32  ;;  %1105 = vst [vmem:[%s2186_s4 + $0x240] sm:$0xff] %v914_v23  ;;  %v766_v28 = vpop.f32.mrb[13].mxu0  ;;  %v916_v52 = vpop.f32.mrb[13].mxu1 }
 0x2cc   :  { %1046 = vst.msk [vmem:[%s2186_s4 + $0x68] sm:$0xff] %vm38_vm0, %v766_v28  ;;  %1106 = vst.msk [vmem:[%s2186_s4 + $0x248] sm:$0xff] %vm38_vm0, %v916_v52  ;;  %v768_v55 = vpop.f32.mrb[14].mxu0  ;;  %v918_v56 = vpop.f32.mrb[14].mxu1 }
 0x2cd   :  { %1047 = vst [vmem:[%s2186_s4 + $0x70] sm:$0xff] %v768_v55  ;;  %1107 = vst [vmem:[%s2186_s4 + $0x250] sm:$0xff] %v918_v56  ;;  %v770_v59 = vpop.f32.mrb[15].mxu0  ;;  %v920_v34 = vpop.f32.mrb[15].mxu1 }
 0x2ce   :  { %1048 = vst.msk [vmem:[%s2186_s4 + $0x78] sm:$0xff] %vm38_vm0, %v770_v59  ;;  %1108 = vst.msk [vmem:[%s2186_s4 + $0x258] sm:$0xff] %vm38_vm0, %v920_v34 }
 0x2d2   :  { %v774_v30 = vpop.f32.mrb[16].mxu0  ;;  %v924_v62 = vpop.f32.mrb[16].mxu1 }
 0x2d3   :  { %1049 = vst [vmem:[%s2186_s4 + $0x80] sm:$0xff] %v774_v30  ;;  %1109 = vst [vmem:[%s2186_s4 + $0x260] sm:$0xff] %v924_v62  ;;  %v776_v53 = vpop.f32.mrb[17].mxu0  ;;  %v926_v50 = vpop.f32.mrb[17].mxu1 }
 0x2d4   :  { %1050 = vst.msk [vmem:[%s2186_s4 + $0x88] sm:$0xff] %vm38_vm0, %v776_v53  ;;  %1110 = vst.msk [vmem:[%s2186_s4 + $0x268] sm:$0xff] %vm38_vm0, %v926_v50  ;;  %v778_v51 = vpop.f32.mrb[18].mxu0  ;;  %v928_v54 = vpop.f32.mrb[18].mxu1 }
 0x2d5   :  { %1051 = vst [vmem:[%s2186_s4 + $0x90] sm:$0xff] %v778_v51  ;;  %1111 = vst [vmem:[%s2186_s4 + $0x270] sm:$0xff] %v928_v54  ;;  %v780_v36 = vpop.f32.mrb[19].mxu0  ;;  %v930_v31 = vpop.f32.mrb[19].mxu1 }
 0x2d6   :  { %1052 = vst.msk [vmem:[%s2186_s4 + $0x98] sm:$0xff] %vm38_vm0, %v780_v36  ;;  %1112 = vst.msk [vmem:[%s2186_s4 + $0x278] sm:$0xff] %vm38_vm0, %v930_v31 }
 0x2da   :  { %v784_v63 = vpop.f32.mrb[20].mxu0  ;;  %v934_v0 = vpop.f32.mrb[20].mxu1 }
 0x2db   :  { %1053 = vst [vmem:[%s2186_s4 + $0xa0] sm:$0xff] %v784_v63  ;;  %1113 = vst [vmem:[%s2186_s4 + $0x280] sm:$0xff] %v934_v0  ;;  %v786_v1 = vpop.f32.mrb[21].mxu0  ;;  %v936_v2 = vpop.f32.mrb[21].mxu1 }
 0x2dc   :  { %1054 = vst.msk [vmem:[%s2186_s4 + $0xa8] sm:$0xff] %vm38_vm0, %v786_v1  ;;  %1114 = vst.msk [vmem:[%s2186_s4 + $0x288] sm:$0xff] %vm38_vm0, %v936_v2  ;;  %v788_v3 = vpop.f32.mrb[22].mxu0  ;;  %v938_v4 = vpop.f32.mrb[22].mxu1 }
 0x2dd   :  { %1055 = vst [vmem:[%s2186_s4 + $0xb0] sm:$0xff] %v788_v3  ;;  %1115 = vst [vmem:[%s2186_s4 + $0x290] sm:$0xff] %v938_v4  ;;  %v790_v5 = vpop.f32.mrb[23].mxu0  ;;  %v940_v6 = vpop.f32.mrb[23].mxu1 }
 0x2de   :  { %1056 = vst.msk [vmem:[%s2186_s4 + $0xb8] sm:$0xff] %vm38_vm0, %v790_v5  ;;  %1116 = vst.msk [vmem:[%s2186_s4 + $0x298] sm:$0xff] %vm38_vm0, %v940_v6 }
 0x2e2   :  { %v794_v7 = vpop.f32.mrb[24].mxu0  ;;  %v944_v45 = vpop.f32.mrb[24].mxu1 }
 0x2e3   :  { %1057 = vst [vmem:[%s2186_s4 + $0xc0] sm:$0xff] %v794_v7  ;;  %1117 = vst [vmem:[%s2186_s4 + $0x2a0] sm:$0xff] %v944_v45  ;;  %v796_v46 = vpop.f32.mrb[25].mxu0  ;;  %v946_v57 = vpop.f32.mrb[25].mxu1 }
 0x2e4   :  { %1058 = vst.msk [vmem:[%s2186_s4 + $0xc8] sm:$0xff] %vm38_vm0, %v796_v46  ;;  %1118 = vst.msk [vmem:[%s2186_s4 + $0x2a8] sm:$0xff] %vm38_vm0, %v946_v57  ;;  %v798_v58 = vpop.f32.mrb[26].mxu0  ;;  %v948_v8 = vpop.f32.mrb[26].mxu1 }
 0x2e5   :  { %1059 = vst [vmem:[%s2186_s4 + $0xd0] sm:$0xff] %v798_v58  ;;  %1119 = vst [vmem:[%s2186_s4 + $0x2b0] sm:$0xff] %v948_v8  ;;  %v800_v9 = vpop.f32.mrb[27].mxu0  ;;  %v950_v16 = vpop.f32.mrb[27].mxu1 }
 0x2e6   :  { %1060 = vst.msk [vmem:[%s2186_s4 + $0xd8] sm:$0xff] %vm38_vm0, %v800_v9  ;;  %1120 = vst.msk [vmem:[%s2186_s4 + $0x2b8] sm:$0xff] %vm38_vm0, %v950_v16 }
 0x2ea   :  { %v804_v17 = vpop.f32.mrb[28].mxu0  ;;  %v954_v19 = vpop.f32.mrb[28].mxu1 }
 0x2eb   :  { %1061 = vst [vmem:[%s2186_s4 + $0xe0] sm:$0xff] %v804_v17  ;;  %1121 = vst [vmem:[%s2186_s4 + $0x2c0] sm:$0xff] %v954_v19  ;;  %v806_v21 = vpop.f32.mrb[29].mxu0  ;;  %v956_v24 = vpop.f32.mrb[29].mxu1 }
 0x2ec   :  { %1062 = vst.msk [vmem:[%s2186_s4 + $0xe8] sm:$0xff] %vm38_vm0, %v806_v21  ;;  %1122 = vst.msk [vmem:[%s2186_s4 + $0x2c8] sm:$0xff] %vm38_vm0, %v956_v24  ;;  %v808_v25 = vpop.f32.mrb[30].mxu0  ;;  %v958_v47 = vpop.f32.mrb[30].mxu1 }
 0x2ed   :  { %1063 = vst [vmem:[%s2186_s4 + $0xf0] sm:$0xff] %v808_v25  ;;  %1123 = vst [vmem:[%s2186_s4 + $0x2d0] sm:$0xff] %v958_v47  ;;  %v810_v48 = vpop.f32.mrb[31].mxu0  ;;  %v960_v18 = vpop.f32.mrb[31].mxu1 }
 0x2ee   :  { %1064 = vst.msk [vmem:[%s2186_s4 + $0xf8] sm:$0xff] %vm38_vm0, %v810_v48  ;;  %1124 = vst.msk [vmem:[%s2186_s4 + $0x2d8] sm:$0xff] %vm38_vm0, %v960_v18 }
 0x2f2   :  { %v814_v15 = vpop.f32.mrb[32].mxu0  ;;  %v964_v20 = vpop.f32.mrb[32].mxu1 }
 0x2f3   :  { %1065 = vst [vmem:[%s2186_s4 + $0x100] sm:$0xff] %v814_v15  ;;  %1125 = vst [vmem:[%s2186_s4 + $0x2e0] sm:$0xff] %v964_v20  ;;  %v816_v40 = vpop.f32.mrb[33].mxu0  ;;  %v966_v14 = vpop.f32.mrb[33].mxu1 }
 0x2f4   :  { %1066 = vst.msk [vmem:[%s2186_s4 + $0x108] sm:$0xff] %vm38_vm0, %v816_v40  ;;  %1126 = vst.msk [vmem:[%s2186_s4 + $0x2e8] sm:$0xff] %vm38_vm0, %v966_v14  ;;  %v818_v60 = vpop.f32.mrb[34].mxu0  ;;  %v968_v27 = vpop.f32.mrb[34].mxu1 }
 0x2f5   :  { %1067 = vst [vmem:[%s2186_s4 + $0x110] sm:$0xff] %v818_v60  ;;  %1127 = vst [vmem:[%s2186_s4 + $0x2f0] sm:$0xff] %v968_v27  ;;  %v820_v61 = vpop.f32.mrb[35].mxu0  ;;  %v970_v33 = vpop.f32.mrb[35].mxu1 }
 0x2f6   :  { %1068 = vst.msk [vmem:[%s2186_s4 + $0x118] sm:$0xff] %vm38_vm0, %v820_v61  ;;  %1128 = vst.msk [vmem:[%s2186_s4 + $0x2f8] sm:$0xff] %vm38_vm0, %v970_v33 }
 0x2fa   :  { %v824_v12 = vpop.f32.mrb[36].mxu0  ;;  %v974_v38 = vpop.f32.mrb[36].mxu1 }
 0x2fb   :  { %1069 = vst [vmem:[%s2186_s4 + $0x120] sm:$0xff] %v824_v12  ;;  %1129 = vst [vmem:[%s2186_s4 + $0x300] sm:$0xff] %v974_v38  ;;  %v826_v13 = vpop.f32.mrb[37].mxu0  ;;  %v976_v39 = vpop.f32.mrb[37].mxu1 }
 0x2fc   :  { %1070 = vst.msk [vmem:[%s2186_s4 + $0x128] sm:$0xff] %vm38_vm0, %v826_v13  ;;  %1130 = vst.msk [vmem:[%s2186_s4 + $0x308] sm:$0xff] %vm38_vm0, %v976_v39  ;;  %v828_v10 = vpop.f32.mrb[38].mxu0  ;;  %v978_v11 = vpop.f32.mrb[38].mxu1 }
 0x2fd   :  { %1071 = vst [vmem:[%s2186_s4 + $0x130] sm:$0xff] %v828_v10  ;;  %1131 = vst [vmem:[%s2186_s4 + $0x310] sm:$0xff] %v978_v11  ;;  %v830_v41 = vpop.f32.mrb[39].mxu0  ;;  %v980_v42 = vpop.f32.mrb[39].mxu1 }
 0x2fe   :  { %1072 = vst.msk [vmem:[%s2186_s4 + $0x138] sm:$0xff] %vm38_vm0, %v830_v41  ;;  %1132 = vst.msk [vmem:[%s2186_s4 + $0x318] sm:$0xff] %vm38_vm0, %v980_v42 }
 0x302   :  { %v834_v43 = vpop.f32.mrb[40].mxu0  ;;  %v984_v26 = vpop.f32.mrb[40].mxu1 }
 0x303   :  { %1073 = vst [vmem:[%s2186_s4 + $0x140] sm:$0xff] %v834_v43  ;;  %1133 = vst [vmem:[%s2186_s4 + $0x320] sm:$0xff] %v984_v26  ;;  %v836_v22 = vpop.f32.mrb[41].mxu0  ;;  %v986_v35 = vpop.f32.mrb[41].mxu1 }
 0x304   :  { %1074 = vst.msk [vmem:[%s2186_s4 + $0x148] sm:$0xff] %vm38_vm0, %v836_v22  ;;  %1134 = vst.msk [vmem:[%s2186_s4 + $0x328] sm:$0xff] %vm38_vm0, %v986_v35  ;;  %v838_v37 = vpop.f32.mrb[42].mxu0  ;;  %v988_v44 = vpop.f32.mrb[42].mxu1 }
 0x305   :  { %1075 = vst [vmem:[%s2186_s4 + $0x150] sm:$0xff] %v838_v37  ;;  %1135 = vst [vmem:[%s2186_s4 + $0x330] sm:$0xff] %v988_v44  ;;  %v840_v49 = vpop.f32.mrb[43].mxu0  ;;  %v990_v29 = vpop.f32.mrb[43].mxu1 }
 0x306   :  { %1076 = vst.msk [vmem:[%s2186_s4 + $0x158] sm:$0xff] %vm38_vm0, %v840_v49  ;;  %1136 = vst.msk [vmem:[%s2186_s4 + $0x338] sm:$0xff] %vm38_vm0, %v990_v29 }
 0x30a   :  { %v844_v32 = vpop.f32.mrb[44].mxu0  ;;  %v994_v23 = vpop.f32.mrb[44].mxu1 }
 0x30b   :  { %1077 = vst [vmem:[%s2186_s4 + $0x160] sm:$0xff] %v844_v32  ;;  %1137 = vst [vmem:[%s2186_s4 + $0x340] sm:$0xff] %v994_v23  ;;  %v846_v28 = vpop.f32.mrb[45].mxu0  ;;  %v996_v52 = vpop.f32.mrb[45].mxu1 }
 0x30c   :  { %1078 = vst.msk [vmem:[%s2186_s4 + $0x168] sm:$0xff] %vm38_vm0, %v846_v28  ;;  %1138 = vst.msk [vmem:[%s2186_s4 + $0x348] sm:$0xff] %vm38_vm0, %v996_v52  ;;  %v848_v55 = vpop.f32.mrb[46].mxu0  ;;  %v998_v56 = vpop.f32.mrb[46].mxu1 }
 0x30d   :  { %1079 = vst [vmem:[%s2186_s4 + $0x170] sm:$0xff] %v848_v55  ;;  %1139 = vst [vmem:[%s2186_s4 + $0x350] sm:$0xff] %v998_v56  ;;  %v850_v59 = vpop.f32.mrb[47].mxu0  ;;  %v1000_v34 = vpop.f32.mrb[47].mxu1 }
 0x30e   :  { %1080 = vst.msk [vmem:[%s2186_s4 + $0x178] sm:$0xff] %vm38_vm0, %v850_v59  ;;  %1140 = vst.msk [vmem:[%s2186_s4 + $0x358] sm:$0xff] %vm38_vm0, %v1000_v34 }
 0x312   :  { %v854_v30 = vpop.f32.mrb[48].mxu0  ;;  %v1004_v62 = vpop.f32.mrb[48].mxu1 }
 0x313   :  { %1081 = vst [vmem:[%s2186_s4 + $0x180] sm:$0xff] %v854_v30  ;;  %1141 = vst [vmem:[%s2186_s4 + $0x360] sm:$0xff] %v1004_v62  ;;  %v856_v53 = vpop.f32.mrb[49].mxu0  ;;  %v1006_v50 = vpop.f32.mrb[49].mxu1 }
 0x314   :  { %1082 = vst.msk [vmem:[%s2186_s4 + $0x188] sm:$0xff] %vm38_vm0, %v856_v53  ;;  %1142 = vst.msk [vmem:[%s2186_s4 + $0x368] sm:$0xff] %vm38_vm0, %v1006_v50  ;;  %v858_v51 = vpop.f32.mrb[50].mxu0  ;;  %v1008_v54 = vpop.f32.mrb[50].mxu1 }
 0x315   :  { %1083 = vst [vmem:[%s2186_s4 + $0x190] sm:$0xff] %v858_v51  ;;  %1143 = vst [vmem:[%s2186_s4 + $0x370] sm:$0xff] %v1008_v54  ;;  %v860_v36 = vpop.f32.mrb[51].mxu0  ;;  %v1010_v31 = vpop.f32.mrb[51].mxu1 }
 0x316   :  { %1084 = vst.msk [vmem:[%s2186_s4 + $0x198] sm:$0xff] %vm38_vm0, %v860_v36  ;;  %1144 = vst.msk [vmem:[%s2186_s4 + $0x378] sm:$0xff] %vm38_vm0, %v1010_v31 }
 0x31a   :  { %v864_v63 = vpop.f32.mrb[52].mxu0  ;;  %v1014_v0 = vpop.f32.mrb[52].mxu1 }
 0x31b   :  { %1085 = vst [vmem:[%s2186_s4 + $0x1a0] sm:$0xff] %v864_v63  ;;  %1145 = vst [vmem:[%s2186_s4 + $0x380] sm:$0xff] %v1014_v0  ;;  %v866_v1 = vpop.f32.mrb[53].mxu0  ;;  %v1016_v2 = vpop.f32.mrb[53].mxu1 }
 0x31c   :  { %1086 = vst.msk [vmem:[%s2186_s4 + $0x1a8] sm:$0xff] %vm38_vm0, %v866_v1  ;;  %1146 = vst.msk [vmem:[%s2186_s4 + $0x388] sm:$0xff] %vm38_vm0, %v1016_v2  ;;  %v868_v3 = vpop.f32.mrb[54].mxu0  ;;  %v1018_v4 = vpop.f32.mrb[54].mxu1 }
 0x31d   :  { %1087 = vst [vmem:[%s2186_s4 + $0x1b0] sm:$0xff] %v868_v3  ;;  %1147 = vst [vmem:[%s2186_s4 + $0x390] sm:$0xff] %v1018_v4  ;;  %v870_v5 = vpop.f32.mrb[55].mxu0  ;;  %v1020_v6 = vpop.f32.mrb[55].mxu1 }
 0x31e   :  { %1088 = vst.msk [vmem:[%s2186_s4 + $0x1b8] sm:$0xff] %vm38_vm0, %v870_v5  ;;  %1148 = vst.msk [vmem:[%s2186_s4 + $0x398] sm:$0xff] %vm38_vm0, %v1020_v6 }
 0x322   :  { %v874_v7 = vpop.f32.mrb[56].mxu0  ;;  %v1024_v45 = vpop.f32.mrb[56].mxu1 }
 0x323   :  { %1089 = vst [vmem:[%s2186_s4 + $0x1c0] sm:$0xff] %v874_v7  ;;  %1149 = vst [vmem:[%s2186_s4 + $0x3a0] sm:$0xff] %v1024_v45  ;;  %v876_v46 = vpop.f32.mrb[57].mxu0  ;;  %v1026_v57 = vpop.f32.mrb[57].mxu1 }
 0x324   :  { %1090 = vst.msk [vmem:[%s2186_s4 + $0x1c8] sm:$0xff] %vm38_vm0, %v876_v46  ;;  %1150 = vst.msk [vmem:[%s2186_s4 + $0x3a8] sm:$0xff] %vm38_vm0, %v1026_v57  ;;  %v878_v58 = vpop.f32.mrb[58].mxu0  ;;  %v1028_v8 = vpop.f32.mrb[58].mxu1 }
 0x325   :  { %1091 = vst [vmem:[%s2186_s4 + $0x1d0] sm:$0xff] %v878_v58  ;;  %1151 = vst [vmem:[%s2186_s4 + $0x3b0] sm:$0xff] %v1028_v8  ;;  %v880_v9 = vpop.f32.mrb[59].mxu0  ;;  %v1030_v16 = vpop.f32.mrb[59].mxu1 }
 0x326   :  { %1092 = vst.msk [vmem:[%s2186_s4 + $0x1d8] sm:$0xff] %vm38_vm0, %v880_v9  ;;  %1152 = vst.msk [vmem:[%s2186_s4 + $0x3b8] sm:$0xff] %vm38_vm0, %v1030_v16 }

</bundles_post_ra>
